<compile_context>
chip_gen: v7x
topology: tpu7x:2x2x1
jax: 0.10.0
libtpu: 0.0.40
codegen_flags: <defaults>
</compile_context>

<pallas_src>
import jax
import jax.numpy as jnp
from jax.experimental import pallas as pl
from jax.experimental.pallas import tpu as pltpu


def _round_up(x, m):
    return ((x + m - 1) // m) * m


def _token_embedding_kernel(x_ref, w_ref, b_ref, o_ref):
    # x_ref: (TM, c_in)  w_ref: (c_in, d_model)  b_ref: (1, d_model)
    # MXU matmul with f32 accumulation + broadcast bias add, cast on store.
    acc = jnp.dot(x_ref[...], w_ref[...], preferred_element_type=jnp.float32)
    o_ref[...] = (acc + b_ref[...]).astype(o_ref.dtype)


@jax.jit
def token_embedding(x, weight_t, bias):
    """x: (B, L, c_in); weight_t: (c_in, d_model); bias: (d_model,)."""
    B, L, c_in = x.shape
    d_model = weight_t.shape[1]
    M = B * L

    # ---- tile over M -------------------------------------------------------
    # Big tiles amortize the ~0.35 us per-grid-step overhead (HBM-bound op),
    # but keep at least 2 grid steps so v7x can shard tiles over its 2 TCs.
    TM_TARGET = 4096
    tm_half = max(_round_up(pl.cdiv(M, 2), 8), 8)   # <= half the rows, mult of 8
    TM = min(TM_TARGET, tm_half)
    grid_m = pl.cdiv(M, TM)                         # ragged last tile is masked

    x2d = x.reshape(M, c_in)
    b2d = bias.reshape(1, d_model)

    # VMEM budget from the actual tile footprint: double-buffered x + out
    # tiles (lane-padded widths) plus resident weight/bias and slack.
    # Clamp at 40 MiB: ample headroom on v7x (64 MiB/TC) and v5e/v6e (128 MiB).
    lanes_in = max(_round_up(c_in, 128), 128)
    lanes_out = _round_up(d_model, 128)
    vmem_bytes = (2 * TM * (lanes_in + lanes_out) * 4
                  + lanes_in * lanes_out * 4
                  + 2 * 1024 * 1024)
    vmem_bytes = min(max(vmem_bytes, 4 * 1024 * 1024), 40 * 1024 * 1024)

    cost = pl.CostEstimate(
        flops=2 * M * c_in * d_model,
        transcendentals=0,
        bytes_accessed=4 * (M * c_in + c_in * d_model + d_model + M * d_model),
    )

    out = pl.pallas_call(
        _token_embedding_kernel,
        out_shape=jax.ShapeDtypeStruct((M, d_model), x.dtype),
        grid_spec=pltpu.PrefetchScalarGridSpec(
            num_scalar_prefetch=0,
            grid=(grid_m,),
            in_specs=[
                pl.BlockSpec((TM, c_in), lambda i: (i, 0)),        # streamed x tile
                pl.BlockSpec((c_in, d_model), lambda i: (0, 0)),   # resident W
                pl.BlockSpec((1, d_model), lambda i: (0, 0)),      # resident bias
            ],
            out_specs=pl.BlockSpec((TM, d_model), lambda i: (i, 0)),
        ),
        compiler_params=pltpu.CompilerParams(
            dimension_semantics=("parallel",),  # independent M tiles (v7x 2 TCs)
            vmem_limit_bytes=vmem_bytes,
        ),
        cost_estimate=cost,
    )(x2d, weight_t, b2d)

    return out.reshape(B, L, d_model)


if __name__ == "__main__":
    # Small shapes consistent with the module: (batch, seq, c_in) -> d_model=512.
    B, L, c_in, d_model = 2, 8, 4, 512

    key = jax.random.PRNGKey(0)
    kx, kw, kb = jax.random.split(key, 3)

    x = jax.random.normal(kx, (B, L, c_in), dtype=jnp.float32)
    # nn.Linear-style parameters: weight (d_model, c_in), bias (d_model,);
    # we store the weight transposed for the kernel.
    bound = 1.0 / (c_in ** 0.5)
    weight = jax.random.uniform(kw, (d_model, c_in), minval=-bound,
                                maxval=bound, dtype=jnp.float32)
    bias = jax.random.uniform(kb, (d_model,), minval=-bound, maxval=bound,
                              dtype=jnp.float32)
    weight_t = weight.T  # (c_in, d_model)

    y = token_embedding(x, weight_t, bias)
    y = jax.block_until_ready(y)

    # Pure-JAX reference check.
    ref = x @ weight.T + bias
    assert y.shape == (B, L, d_model), y.shape
    assert jnp.allclose(y, ref, atol=1e-5, rtol=1e-5), "mismatch vs reference"

    print("KERNEL_OK")
</pallas_src>

<mosaic_0001>
module attributes {stable_mosaic.version = 11 : i64} {
  func.func @_token_embedding_kernel(%arg0: i32, %arg1: memref<8x4xf32, #tpu.memory_space<vmem>>, %arg2: memref<4x512xf32, #tpu.memory_space<vmem>>, %arg3: memref<1x512xf32, #tpu.memory_space<vmem>>, %arg4: memref<8x512xf32, #tpu.memory_space<vmem>>) attributes {dimension_semantics = [#tpu.dimension_semantics<parallel>], iteration_bounds = array<i64: 2>, scalar_prefetch = 0 : i64, scratch_operands = 0 : i64, tpu.core_type = #tpu.core_type<tc>, window_params = [{transform_indices = @transform_0, window_bounds = array<i64: 8, 4>}, {pipeline_mode = #tpu.pipeline_mode<synchronous>, transform_indices = @transform_1, window_bounds = array<i64: 4, 512>}, {pipeline_mode = #tpu.pipeline_mode<synchronous>, transform_indices = @transform_2, window_bounds = array<i64: 1, 512>}, {transform_indices = @transform_3, window_bounds = array<i64: 8, 512>}]} {
    %c0 = arith.constant 0 : index
    %c0_0 = arith.constant 0 : index
    %0 = vector.load %arg1[%c0, %c0_0] : memref<8x4xf32, #tpu.memory_space<vmem>>, vector<8x4xf32>
    %c0_1 = arith.constant 0 : index
    %c0_2 = arith.constant 0 : index
    %1 = vector.load %arg2[%c0_1, %c0_2] : memref<4x512xf32, #tpu.memory_space<vmem>>, vector<4x512xf32>
    %cst = arith.constant dense<0.000000e+00> : vector<8x512xf32>
    %2 = tpu.matmul %0, %1, %cst {dimension_numbers = #tpu.dot_dimension_numbers<[1], [0], [0], [1], [0, 0, 1, 1], [], []>} : vector<8x4xf32>, vector<4x512xf32>, vector<8x512xf32> -> vector<8x512xf32>
    %c0_3 = arith.constant 0 : index
    %c0_4 = arith.constant 0 : index
    %3 = vector.load %arg3[%c0_3, %c0_4] : memref<1x512xf32, #tpu.memory_space<vmem>>, vector<1x512xf32>
    %4 = vector.broadcast %3 : vector<1x512xf32> to vector<8x512xf32>
    %5 = arith.addf %2, %4 : vector<8x512xf32>
    %c0_5 = arith.constant 0 : index
    %c0_6 = arith.constant 0 : index
    %6 = vector.load %arg4[%c0_5, %c0_6] : memref<8x512xf32, #tpu.memory_space<vmem>>, vector<8x512xf32>
    tpu.vector_store %arg4[%c0_5, %c0_6], %5 {strides = array<i32>} : memref<8x512xf32, #tpu.memory_space<vmem>>, vector<8x512xf32>,
    return
  }
  func.func @transform_0(%arg0: i32) -> (i32, i32) {
    %c0_i32 = arith.constant 0 : i32
    %c0_i32_0 = arith.constant 0 : i32
    return %arg0, %c0_i32 : i32, i32
  }
  func.func @transform_1(%arg0: i32) -> (i32, i32) {
    %c0_i32 = arith.constant 0 : i32
    %c0_i32_0 = arith.constant 0 : i32
    %c0_i32_1 = arith.constant 0 : i32
    return %c0_i32, %c0_i32_0 : i32, i32
  }
  func.func @transform_2(%arg0: i32) -> (i32, i32) {
    %c0_i32 = arith.constant 0 : i32
    %c0_i32_0 = arith.constant 0 : i32
    %c0_i32_1 = arith.constant 0 : i32
    return %c0_i32, %c0_i32_0 : i32, i32
  }
  func.func @transform_3(%arg0: i32) -> (i32, i32) {
    %c0_i32 = arith.constant 0 : i32
    %c0_i32_0 = arith.constant 0 : i32
    return %arg0, %c0_i32 : i32, i32
  }
}

</mosaic_0001>

<bundles_post_ra>
// kernel: token_embedding.1
= control target key start
LH: loop header
LB: loop body
LE: loop exit
PB: predicated region body
PF: predicated region fallthrough
CT: control target
= control target key end

     0   :  { %8 = vsyncpa [#allocation3], 0  ;;  %s683_s0 = inlined_call_operand.vmem [shape: f32[16,4], index: 0, kind: input, shape index: {}]   ;;  %s684_s1 = inlined_call_operand.vmem [shape: f32[4,512], index: 1, kind: input, shape index: {}]   ;;  %s685_s2 = inlined_call_operand.vmem [shape: f32[1,512], index: 2, kind: input, shape index: {}]   ;;  %s686_s3 = inlined_call_operand.hbm [shape: f32[16,512], index: 3, kind: output, shape index: {}]  }
   0x1   :  { %10 = vsyncpa [#allocation3 + $0x1], 0  ;;  %s574_s12 = smov 0   ;;  %s576_s13 = smov 0  }
   0x2   :  { %s578_s14 = smov 0   ;;  %s580_s15 = smov 0  }
   0x3 LB: > { %s595_s16 = sadd.s32 4294967295, %s550_s15   ;;  %s428_s17 = sadd.s32 4294967294, %s550_s15   ;;  %s550_s15 = sphi %s580_s15, %s692_s15   ;;  %s546_s14 = sphi %s578_s14, %s691_s14   ;;  %s542_s13 = sphi %s576_s13, %s690_s13   ;;  %s538_s12 = sphi %s574_s12, %s689_s12  }
   0x4   : > { %s599_s18 = sadd.s32 1, %s550_s15   ;;  %s91_s19 = sadd.s32 1, %s546_s14 }
   0x5   : > { %s88_s20 = ssub.s32 %s550_s15, %s599_s18  ;;  %p101_p0 = scmp.ne.s32.totalorder %s546_s14, %s542_s13 }
   0x6   : > { %p89_p1 = scmp.eq.s32.totalorder %s88_s20, 0  ;;  %p102_p2 = scmp.eq.s32.totalorder %s595_s16, 1 }
   0x7   : > { %p107_p3 = scmp.ne.s32.totalorder %s542_s13, %s538_s12  ;;  %p108_p4 = scmp.eq.s32.totalorder %s428_s17, 1 }
   0x8   : > { %s610_s21 = scalar_select %p89_p1, %s546_s14, %s91_s19  }
   0x9   : > { %p612_p5 = por %p102_p2, %p101_p0  ;;  %p616_p6 = por %p108_p4, %p107_p3 }
   0xa   : > { %p431_p7 = scmp.ge.s32.totalorder %s550_s15, 1  ;;  %p139_p8 = scmp.lt.s32.totalorder %s550_s15, 3 }
   0xc   : > { %p140_p9 = pnand %p431_p7, %p139_p8 }
   0xd   : > { %v167_v0 = vld [vmem:[%s684_s1] sm:$0xff] (!%p140_p9)  ;;  %vm199_vm0 = vcmask (!%p140_p9), 1043456   ;;  %v168_v1 = vld [vmem:[%s684_s1 + $0x8] sm:$0xff] (!%p140_p9)  ;;  %p162_p10 = scmp.lt.s32.totalorder (!%p140_p9), %s595_s16, 1  ;;  %v552_v4 = vmov (!%p140_p9), 0.0   ;;  %vm195_vm1 = vcmask (!%p140_p9), 31744   ;;  %v171_v6 = vlaneseq (!%p140_p9) }
   0xe   : > { %143 = sbr.rel (%p140_p9) target bundleno = 255 (0xff), region = 32  ;;  %v193_v2 = vcombine.high (!%p140_p9), %v167_v0, %v167_v0  ;;  %v194_v3 = vcombine.high (!%p140_p9), %v168_v1, %v168_v1  ;;  %272 = vmatprep.mubr.f32.mxu0 (!%p140_p9), %v552_v4  ;;  %343 = vmatprep.mubr.f32.mxu1 (!%p140_p9), %v552_v4  ;;  %s159_s6 = sand.u32 (!%p140_p9), 1, %s542_s13   ;;  %v169_v10 = vld [vmem:[%s685_s2] sm:$0xf] (!%p140_p9) }
   0xf   : > { %v172_v7 = vshrl.u32 (!%p140_p9), %v171_v6, 7  ;;  %s432_s7 = sshll.u32 (!%p140_p9), %s159_s6, 5  ;;  %s445_s10 = sshll.u32 (!%p140_p9), %s595_s16, 9 }
  0x10   : > { %434 = vmatprep.subr.msk.mxu0 (!%p140_p9), %vm199_vm0, %v193_v2  ;;  %437 = vmatprep.subr.msk.mxu1 (!%p140_p9), %vm199_vm0, %v194_v3  ;;  %s161_s11 = scalar_lea.vmem (!%p140_p9), [#allocation2], %s432_s7  ;;  %s641_s24 = scalar_lea.hbm (!%p140_p9), %s686_s3, %s445_s10 }
  0x11   : > { %435 = vmatpush1.msk.msra.mxu0 (!%p140_p9), %vm199_vm0, %v167_v0  ;;  %438 = vmatpush1.msk.msra.mxu1 (!%p140_p9), %vm199_vm0, %v168_v1  ;;  %v173_v8 = vsub.s32 (!%p140_p9), 0, %v172_v7  ;;  %v181_v9 = vsub.s32 (!%p140_p9), 2, %v172_v7  ;;  %v177_v11 = vsub.s32 (!%p140_p9), 1, %v172_v7  ;;  %v185_v12 = vsub.s32 (!%p140_p9), 3, %v172_v7  ;;  %s369_s17 = sshll.u32 (!%p140_p9), %s161_s11, 4  ;;  %s553_s26 = smov (!%p140_p9), [#allocation2]   ;;  %s643_s17 = int_to_ptr.vmem [resolvable:$true] %s369_s17 }
  0x12   : > { %s488_s25 = scalar_lea.vmem (!%p140_p9), %s643_s17, 512  ;;  %s492_s27 = sshll.u32 (!%p140_p9), %s553_s26, 4  ;;  %s493_s27 = int_to_ptr.vmem [resolvable:$false] %s492_s27 }
  0x13   : > { %v174_v13 = vrot.slane (!%p140_p9), %v169_v10, %v173_v8  ;;  %v182_v14 = vrot.slane (!%p140_p9), %v169_v10, %v181_v9  ;;  %v178_v15 = vrot.slane (!%p140_p9), %v169_v10, %v177_v11  ;;  %v186_v16 = vrot.slane (!%p140_p9), %v169_v10, %v185_v12  ;;  %p489_p11 = scmp.ne.s32.totalorder (!%p140_p9), %s643_s17, %s488_s25  ;;  %p495_p0 = scmp.lt.s32.totalorder (!%p140_p9), %s643_s17, %s493_s27 }
  0x15   : > { %s163_s28 = scalar_select %p162_p10, %s595_s16, 1 }
  0x16   : > { %s355_s16 = scalar_lea.sflag [#allocation3], %s159_s6  ;;  %p490_p12 = pnand %p489_p11, %p612_p5 }
  0x17   : > { %s433_s29 = sshll.u32 %s163_s28, 3  ;;  %s494_s28 = scalar_lea.vmem %s493_s27, 1024 }
  0x18   : > { %s165_s5 = scalar_lea.vmem %s683_s0, %s433_s29  ;;  %p491_p13 = pneg %p490_p12 }
  0x19   : > { %v166_v5 = vld [vmem:[%s165_s5] sm:$0xff]  ;;  %p496_p1 = scmp.lt.s32.totalorder %s494_s28, %s488_s25 }
  0x1a   : > { %436 = vmatmul.mubr.msk.f32.vlgmr.msra.gmra.mrb[0].mxu0 %vm195_vm1, %v166_v5  ;;  %439 = vmatmul.mubr.msk.f32.vlgmr.msra.gmra.mrb[0].mxu1 %vm195_vm1, %v166_v5 }
  0x1b   : > { %p497_p2 = por %p496_p1, %p495_p0 }
  0x1d   : > { %p498_p3 = pnand %p497_p2, %p491_p13 }
  0xed   : > { %v274_v17 = vpop.f32.mrb[0].mxu0  ;;  %v345_v18 = vpop.f32.mrb[0].mxu1 }
  0xee   : > { %v275_v19 = vadd.f32 %v274_v17, %v174_v13  ;;  %v346_v20 = vadd.f32 %v345_v18, %v182_v14  ;;  %v276_v21 = vpop.f32.mrb[1].mxu0  ;;  %v347_v22 = vpop.f32.mrb[1].mxu1 }
  0xef   : > { %v277_v23 = vadd.f32 %v276_v21, %v178_v15  ;;  %v348_v24 = vadd.f32 %v347_v22, %v186_v16 }
  0xf0   : > { %350 = vst [vmem:[%s161_s11] sm:$0xff] %v275_v19  ;;  %352 = vst [vmem:[%s161_s11 + $0x10] sm:$0xff] %v346_v20 }
  0xf1   : > { %351 = vst [vmem:[%s161_s11 + $0x8] sm:$0xff] %v277_v23  ;;  %353 = vst [vmem:[%s161_s11 + $0x18] sm:$0xff] %v348_v24 }
  0xf2   : > { %501 = shalt.err (!%p498_p3)
}
  0xf3   : > { %s502_s29 = scalar_lea.hbm %s641_s24, 512  ;;  %s506_s5 = scalar_lea.hbm %s686_s3, 1024 }
  0xf4   : > { %p503_p4 = scmp.ne.s32.totalorder %s641_s24, %s502_s29  ;;  %p507_p9 = scmp.lt.u32.totalorder %s641_s24, %s686_s3 }
  0xf5   : > { %p508_p10 = scmp.lt.u32.totalorder %s506_s5, %s502_s29  ;;  %p510_p12 = scmp.lt.u32.totalorder %s502_s29, %s641_s24 }
  0xf6   : > { %p504_p7 = pnand %p503_p4, %p612_p5 }
  0xf7   : > { %p509_p11 = por %p508_p10, %p507_p9 }
  0xf8   : > { %p505_p8 = pneg %p504_p7 }
  0xf9   : > { %p511_p13 = por %p510_p12, %p509_p11 }
  0xfb   : > { %p512_p0 = pnand %p511_p13, %p505_p8 }
  0xfd   : > { %515 = shalt.err (!%p512_p0)
}
  0xfe   : > { %446 = dma.vmem_to_hbm [thread:$0]  (%p612_p5), %s643_s17, 512, %s641_s24, %s355_s16  }
  0xff PF: > { %p452_p1 = scmp.ge.s32.totalorder %s550_s15, 2  ;;  %s381_s8 = sand.u32 1, %s538_s12  }
 0x100   : > { %s382_s9 = scalar_lea.sflag [#allocation3], %s381_s8 }
 0x101   : > { %p449_p2 = pnand %p452_p1, %p616_p6 }
 0x103   : > { %533 = dma.done.wait (!%p449_p2), %s382_s9, 512  }
 0x104   : > { %535 = vsyncadd (!%p449_p2), %s382_s9, 4294966784  ;;  %p13_p3 = scmp.ge.s32.totalorder %s599_s18, 4   ;;  %s689_s12 = smov %s542_s13 }
 0x105   : > { %s690_s13 = smov %s546_s14  ;;  %s691_s14 = smov %s610_s21 }
 0x106   : > { %s692_s15 = smov %s599_s18  ;;  %15 = sbr.rel (!%p13_p3) target bundleno = 3 (0x3), region = 67 }
 0x10d   :  { %387 = vsyncpa [#allocation3], 1 }
 0x10e   :  { %389 = vsyncpa [#allocation3 + $0x1], 1 }

</bundles_post_ra>
